<compile_context>
chip_gen: v6e
topology: v6e:2x2x1
jax: 0.10.0
libtpu: 0.0.40
codegen_flags: <defaults>
</compile_context>

<pallas_src>
from functools import partial

import jax
import jax.numpy as jnp
from jax.experimental import pallas as pl
from jax.experimental.pallas import tpu as pltpu


def _round_up(n, m):
    return ((n + m - 1) // m) * m


def conv_bn_silu_kernel(x_ref, w_ref, scale_ref, bias_ref, o_ref):
    """One row-tile of: y = SiLU( (x @ w) * scale + bias ).

    x_ref:     (tm, K)   bf16 activations (rows = flattened pixels, K lane-folded channels)
    w_ref:     (K, N)    bf16 (block-diagonal when lane-folded) pointwise-conv weight
    scale_ref: (1, N)    f32 folded BatchNorm scale  = gamma / sqrt(var + eps)
    bias_ref:  (1, N)    f32 folded BatchNorm bias   = beta - mean * scale
    o_ref:     (tm, N)   f32 output tile (N is a multiple of 128 -> unmasked stores)
    """
    acc = jnp.dot(x_ref[...], w_ref[...], preferred_element_type=jnp.float32)
    y = acc * scale_ref[...] + bias_ref[...]
    o_ref[...] = (y * jax.nn.sigmoid(y)).astype(o_ref.dtype)


def _fused_pointwise_conv_bn_silu(x_rows, w_mat, scale, bias, *, tm=1024,
                                  out_dtype=jnp.float32):
    """y = SiLU((x_rows @ w_mat) * scale + bias) with row-tiled Pallas matmul.

    x_rows: (M, Cin)  channels-last flattened activations
    w_mat:  (Cin, Cout)
    scale, bias: (Cout,) eval-mode folded BatchNorm affine
    returns (M, Cout) in out_dtype.
    """
    M, Cin = x_rows.shape
    Cout = w_mat.shape[1]

    # Lane-dense folding (review item: avoid masked vst for Cout < 128):
    # view `fold` consecutive rows as one row.  Row-major bytes are unchanged,
    # so the x reshape and the final un-fold are free; the weight becomes
    # block-diagonal and scale/bias are tiled.
    fold = 128 // Cout if (Cout < 128 and 128 % Cout == 0) else 1
    row_align = 8 * fold

    # Big tiles to amortize per-step pipeline overhead, but handle ragged M by
    # padding (no hard asserts), and keep >=2 grid steps when possible so the
    # "parallel" grid axis can be sharded across the two TensorCores on v7x.
    tm_eff = min(_round_up(tm, row_align), _round_up(M, row_align))
    if _round_up(M, row_align) >= 2 * row_align:
        while _round_up(M, tm_eff) // tm_eff < 2 and tm_eff > row_align:
            tm_eff = max(row_align, _round_up(tm_eff // 2, row_align))
    M_pad = _round_up(M, tm_eff)

    # bf16 input streams (mem-bound kernel); accumulation stays f32 on the MXU.
    x_rows = x_rows.astype(jnp.bfloat16)
    w_mat = w_mat.astype(jnp.bfloat16)
    if M_pad != M:
        x_rows = jnp.pad(x_rows, ((0, M_pad - M), (0, 0)))

    if fold > 1:
        x_f = x_rows.reshape(M_pad // fold, fold * Cin)            # free reshape
        w_f = jnp.kron(jnp.eye(fold, dtype=w_mat.dtype), w_mat)    # block-diag, tiny
        scale_f = jnp.tile(scale.reshape(1, Cout).astype(jnp.float32), (1, fold))
        bias_f = jnp.tile(bias.reshape(1, Cout).astype(jnp.float32), (1, fold))
    else:
        x_f, w_f = x_rows, w_mat
        scale_f = scale.reshape(1, Cout).astype(jnp.float32)
        bias_f = bias.reshape(1, Cout).astype(jnp.float32)

    Mf, Kf = x_f.shape
    Nf = w_f.shape[1]
    tmf = tm_eff // fold
    grid = (Mf // tmf,)

    cost = pl.CostEstimate(
        flops=2 * M_pad * Cin * Cout,
        transcendentals=M_pad * Cout,
        bytes_accessed=(x_f.size * 2 + w_f.size * 2
                        + Mf * Nf * jnp.dtype(out_dtype).itemsize),
    )

    out = pl.pallas_call(
        conv_bn_silu_kernel,
        out_shape=jax.ShapeDtypeStruct((Mf, Nf), out_dtype),
        grid_spec=pltpu.PrefetchScalarGridSpec(
            num_scalar_prefetch=0,
            grid=grid,
            in_specs=[
                pl.BlockSpec((tmf, Kf), lambda i: (i, 0)),   # activation row-tile
                pl.BlockSpec((Kf, Nf), lambda i: (0, 0)),    # full (folded) weight
                pl.BlockSpec((1, Nf), lambda i: (0, 0)),     # BN scale
                pl.BlockSpec((1, Nf), lambda i: (0, 0)),     # BN bias
            ],
            out_specs=pl.BlockSpec((tmf, Nf), lambda i: (i, 0)),
        ),
        compiler_params=pltpu.CompilerParams(
            dimension_semantics=("parallel",)),
        cost_estimate=cost,
    )(x_f, w_f, scale_f, bias_f)

    # Un-fold (free) and drop row padding.
    return out.reshape(M_pad, Cout)[:M]


@partial(jax.jit, static_argnames=("eps", "tm"))
def conv_forward(x, conv_weight, bn_gamma, bn_beta, bn_mean, bn_var, *,
                 eps=1e-5, tm=1024):
    """Conv.forward for the module defaults (k=1, s=1, p=0, g=1, act=SiLU).

    x:           (B, C, H, W) NCHW float32
    conv_weight: (c2, C, 1, 1)
    returns:     (B, c2, H, W) NCHW float32  =  SiLU(BN(Conv2d(x)))
    """
    B, C, H, W = x.shape
    c2 = conv_weight.shape[0]

    x_rows = jnp.transpose(x, (0, 2, 3, 1)).reshape(B * H * W, C)
    w_mat = conv_weight.reshape(c2, C).T
    scale = bn_gamma / jnp.sqrt(bn_var + eps)
    bias = bn_beta - bn_mean * scale

    out = _fused_pointwise_conv_bn_silu(x_rows, w_mat, scale, bias, tm=tm)
    return out.reshape(B, H, W, c2).transpose(0, 3, 1, 2)


@partial(jax.jit, static_argnames=("eps", "tm"))
def focus_forward(x, conv_weight, bn_gamma, bn_beta, bn_mean, bn_var, *,
                  eps=1e-5, tm=1024):
    """Focus-style usage: space-to-depth then Conv(4*C, c2, k=1) + BN + SiLU.

    The space-to-depth is a single fused reshape/transpose: flattening the
    (wp, hp, C) axes last reproduces the channel order of
    torch.cat([x[..,::2,::2], x[..,1::2,::2], x[..,::2,1::2], x[..,1::2,1::2]])
    exactly, so no weight permutation is needed.
    """
    B, C, H, W = x.shape
    c2 = conv_weight.shape[0]
    Ho, Wo = H // 2, W // 2
    Cin = 4 * C

    x_rows = (x.reshape(B, C, Ho, 2, Wo, 2)
                .transpose(0, 2, 4, 5, 3, 1)            # (B, Ho, Wo, wp, hp, C)
                .reshape(B * Ho * Wo, Cin))
    w_mat = conv_weight.reshape(c2, Cin).T
    scale = bn_gamma / jnp.sqrt(bn_var + eps)
    bias = bn_beta - bn_mean * scale

    out = _fused_pointwise_conv_bn_silu(x_rows, w_mat, scale, bias, tm=tm)
    return out.reshape(B, Ho, Wo, c2).transpose(0, 3, 1, 2)


if __name__ == "__main__":
    key = jax.random.PRNGKey(0)
    kx, kw1, kw2, kg, kb, km, kv = jax.random.split(key, 7)

    B, C, H, W = 2, 4, 16, 16
    c2 = 32
    eps = 1e-5

    x = jax.random.normal(kx, (B, C, H, W), dtype=jnp.float32)

    bn_gamma = 1.0 + 0.1 * jax.random.normal(kg, (c2,), dtype=jnp.float32)
    bn_beta = 0.1 * jax.random.normal(kb, (c2,), dtype=jnp.float32)
    bn_mean = 0.05 * jax.random.normal(km, (c2,), dtype=jnp.float32)
    bn_var = jnp.abs(jax.random.normal(kv, (c2,), dtype=jnp.float32)) + 0.5
    scale = bn_gamma / jnp.sqrt(bn_var + eps)
    bias = bn_beta - bn_mean * scale

    def bf16_round(a):  # mimic the kernel's bf16 input rounding in the reference
        return a.astype(jnp.bfloat16).astype(jnp.float32)

    # --- 1) The Conv module itself: Conv(c1=4, c2=32, k=1, s=1), SiLU -------
    w1 = jax.random.normal(kw1, (c2, C, 1, 1), dtype=jnp.float32) * 0.1
    out1 = jax.block_until_ready(
        conv_forward(x, w1, bn_gamma, bn_beta, bn_mean, bn_var))
    conv1 = jnp.einsum("bchw,oc->bohw", bf16_round(x), bf16_round(w1.reshape(c2, C)))
    bn1 = conv1 * scale[None, :, None, None] + bias[None, :, None, None]
    ref1 = bn1 * jax.nn.sigmoid(bn1)
    assert out1.shape == (B, c2, H, W), out1.shape
    assert jnp.allclose(out1, ref1, atol=2e-3, rtol=2e-3), \
        float(jnp.max(jnp.abs(out1 - ref1)))

    # --- 2) Focus-style usage (previous kernel's forward): ------------------
    w2 = jax.random.normal(kw2, (c2, 4 * C, 1, 1), dtype=jnp.float32) * 0.1
    out2 = jax.block_until_ready(
        focus_forward(x, w2, bn_gamma, bn_beta, bn_mean, bn_var))
    x_sd = jnp.concatenate(
        [x[..., ::2, ::2], x[..., 1::2, ::2], x[..., ::2, 1::2], x[..., 1::2, 1::2]],
        axis=1)
    conv2 = jnp.einsum("bchw,oc->bohw", bf16_round(x_sd),
                       bf16_round(w2.reshape(c2, 4 * C)))
    bn2 = conv2 * scale[None, :, None, None] + bias[None, :, None, None]
    ref2 = bn2 * jax.nn.sigmoid(bn2)
    assert out2.shape == (B, c2, H // 2, W // 2), out2.shape
    assert jnp.allclose(out2, ref2, atol=2e-3, rtol=2e-3), \
        float(jnp.max(jnp.abs(out2 - ref2)))

    print("KERNEL_OK")
</pallas_src>

<mosaic_0001>
module attributes {stable_mosaic.version = 11 : i64} {
  func.func @conv_bn_silu_kernel(%arg0: i32, %arg1: memref<64x16xbf16, #tpu.memory_space<vmem>>, %arg2: memref<16x128xbf16, #tpu.memory_space<vmem>>, %arg3: memref<1x128xf32, #tpu.memory_space<vmem>>, %arg4: memref<1x128xf32, #tpu.memory_space<vmem>>, %arg5: memref<64x128xf32, #tpu.memory_space<vmem>>) attributes {dimension_semantics = [#tpu.dimension_semantics<parallel>], iteration_bounds = array<i64: 2>, scalar_prefetch = 0 : i64, scratch_operands = 0 : i64, tpu.core_type = #tpu.core_type<tc>, window_params = [{transform_indices = @transform_0, window_bounds = array<i64: 64, 16>}, {pipeline_mode = #tpu.pipeline_mode<synchronous>, transform_indices = @transform_1, window_bounds = array<i64: 16, 128>}, {pipeline_mode = #tpu.pipeline_mode<synchronous>, transform_indices = @transform_2, window_bounds = array<i64: 1, 128>}, {pipeline_mode = #tpu.pipeline_mode<synchronous>, transform_indices = @transform_3, window_bounds = array<i64: 1, 128>}, {transform_indices = @transform_4, window_bounds = array<i64: 64, 128>}]} {
    %c0 = arith.constant 0 : index
    %c0_0 = arith.constant 0 : index
    %0 = vector.load %arg1[%c0, %c0_0] : memref<64x16xbf16, #tpu.memory_space<vmem>>, vector<64x16xbf16>
    %c0_1 = arith.constant 0 : index
    %c0_2 = arith.constant 0 : index
    %1 = vector.load %arg2[%c0_1, %c0_2] : memref<16x128xbf16, #tpu.memory_space<vmem>>, vector<16x128xbf16>
    %cst = arith.constant dense<0.000000e+00> : vector<64x128xf32>
    %2 = tpu.matmul %0, %1, %cst {dimension_numbers = #tpu.dot_dimension_numbers<[1], [0], [0], [1], [0, 0, 1, 1], [], []>} : vector<64x16xbf16>, vector<16x128xbf16>, vector<64x128xf32> -> vector<64x128xf32>
    %c0_3 = arith.constant 0 : index
    %c0_4 = arith.constant 0 : index
    %3 = vector.load %arg3[%c0_3, %c0_4] : memref<1x128xf32, #tpu.memory_space<vmem>>, vector<1x128xf32>
    %4 = vector.broadcast %3 : vector<1x128xf32> to vector<64x128xf32>
    %5 = arith.mulf %2, %4 : vector<64x128xf32>
    %c0_5 = arith.constant 0 : index
    %c0_6 = arith.constant 0 : index
    %6 = vector.load %arg4[%c0_5, %c0_6] : memref<1x128xf32, #tpu.memory_space<vmem>>, vector<1x128xf32>
    %7 = vector.broadcast %6 : vector<1x128xf32> to vector<64x128xf32>
    %8 = arith.addf %5, %7 : vector<64x128xf32>
    %9 = arith.negf %8 : vector<64x128xf32>
    %10 = math.exp %9 : vector<64x128xf32>
    %cst_7 = arith.constant 1.000000e+00 : f32
    %11 = vector.broadcast %cst_7 : f32 to vector<64x128xf32>
    %12 = arith.addf %11, %10 : vector<64x128xf32>
    %13 = arith.divf %11, %12 : vector<64x128xf32>
    %14 = arith.mulf %8, %13 : vector<64x128xf32>
    %c0_8 = arith.constant 0 : index
    %c0_9 = arith.constant 0 : index
    %15 = vector.load %arg5[%c0_8, %c0_9] : memref<64x128xf32, #tpu.memory_space<vmem>>, vector<64x128xf32>
    tpu.vector_store %arg5[%c0_8, %c0_9], %14 {strides = array<i32>} : memref<64x128xf32, #tpu.memory_space<vmem>>, vector<64x128xf32>,
    return
  }
  func.func @transform_0(%arg0: i32) -> (i32, i32) {
    %c0_i32 = arith.constant 0 : i32
    %c0_i32_0 = arith.constant 0 : i32
    return %arg0, %c0_i32 : i32, i32
  }
  func.func @transform_1(%arg0: i32) -> (i32, i32) {
    %c0_i32 = arith.constant 0 : i32
    %c0_i32_0 = arith.constant 0 : i32
    %c0_i32_1 = arith.constant 0 : i32
    return %c0_i32, %c0_i32_0 : i32, i32
  }
  func.func @transform_2(%arg0: i32) -> (i32, i32) {
    %c0_i32 = arith.constant 0 : i32
    %c0_i32_0 = arith.constant 0 : i32
    %c0_i32_1 = arith.constant 0 : i32
    return %c0_i32, %c0_i32_0 : i32, i32
  }
  func.func @transform_3(%arg0: i32) -> (i32, i32) {
    %c0_i32 = arith.constant 0 : i32
    %c0_i32_0 = arith.constant 0 : i32
    %c0_i32_1 = arith.constant 0 : i32
    return %c0_i32, %c0_i32_0 : i32, i32
  }
  func.func @transform_4(%arg0: i32) -> (i32, i32) {
    %c0_i32 = arith.constant 0 : i32
    %c0_i32_0 = arith.constant 0 : i32
    return %arg0, %c0_i32 : i32, i32
  }
}

</mosaic_0001>

<bundles_post_ra>
// kernel: conv_forward.1
= control target key start
LH: loop header
LB: loop body
LE: loop exit
PB: predicated region body
PF: predicated region fallthrough
CT: control target
= control target key end

     0   :  { %s591_s15 = smov 0   ;;  %s625_s0 = inlined_call_operand.vmem [shape: bf16[128,16], index: 0, kind: input, shape index: {}]   ;;  %s626_s1 = inlined_call_operand.vmem [shape: bf16[16,128], index: 1, kind: input, shape index: {}]   ;;  %s627_s2 = inlined_call_operand.vmem [shape: f32[1,128], index: 2, kind: input, shape index: {}]   ;;  %s628_s3 = inlined_call_operand.vmem [shape: f32[1,128], index: 3, kind: input, shape index: {}]   ;;  %s629_s4 = inlined_call_operand.vmem [shape: f32[128,128], index: 4, kind: output, shape index: {}]  }
   0x1 LB: > { %s466_s16 = sadd.s32 4294967295, %s564_s15   ;;  %p470_p0 = scmp.ge.s32.totalorder %s564_s15, 1  ;;  %s564_s15 = sphi %s591_s15, %s14_s15  }
   0x2   : > { %p163_p1 = scmp.lt.s32.totalorder %s564_s15, 3 }
   0x4   : > { %p164_p2 = pnand %p470_p0, %p163_p1 }
   0x5   : > { %s471_s19 = sshll.u32 (!%p164_p2), %s466_s16, 3 }
   0x6   : > { %167 = sbr.rel (%p164_p2) target bundleno = 255 (0xff), region = 36  ;;  %p190_p3 = scmp.lt.s32.totalorder (!%p164_p2), %s471_s19, 15 }
   0xb   : > { %v521_v0 = vld [vmem:[%s626_s1] sm:$0xff]   ;;  %s631_s19 = smov (!%p190_p3, %s471_s19), 15  ;;  %vm238_vm0 = vcmask 130048  }
   0xc   : > { %501 = vmatprep.subr.bf16.mxu0 %v521_v0  ;;  %511 = vmatprep.subr.bf16.mxu1 %v521_v0  ;;  %s472_s20 = sshll.u32 %s631_s19, 2  ;;  %v484_v5 = vld [vmem:[%s627_s2] ss:$0 sm:$0xff]  ;;  %s474_s28 = sshll.u32 %s631_s19, 3 }
   0xd   : > { %502 = vmatpush3.bf16.msra.mxu0 %v521_v0  ;;  %512 = vmatpush3.bf16.msra.mxu1 %v521_v0  ;;  %s193_s23 = scalar_lea.vmem %s625_s0, %s472_s20  ;;  %v485_v7 = vld [vmem:[%s628_s3] ss:$0 sm:$0xff]  ;;  %s199_s5 = scalar_lea.vmem %s629_s4, %s474_s28 }
   0xe   : > { %v522_v1 = vld [vmem:[%s193_s23] sm:$0xff]   ;;  %v523_v2 = vld [vmem:[%s193_s23 + $0x10] sm:$0xff]   ;;  %v524_v3 = vld [vmem:[%s193_s23 + $0x8] sm:$0xff]  }
   0xf   : > { %503 = vmatprep.mubr.msk.bf16.mxu0 %vm238_vm0, %v522_v1  ;;  %507 = vmatprep.mubr.msk.bf16.mxu1 %vm238_vm0, %v523_v2  ;;  %v525_v4 = vld [vmem:[%s193_s23 + $0x18] sm:$0xff]  }
  0x10   : > { %504 = vmatmul.mubr.msk.bf16.vlgmr.msra.gmra.mxu0 %vm238_vm0, %v524_v3  ;;  %508 = vmatmul.mubr.msk.bf16.vlgmr.msra.gmra.mxu1 %vm238_vm0, %v525_v4 }
  0xd0   : > { %v505_v6 = vpop.f32.mrf.mxu0  ;;  %v509_v9 = vpop.f32.mrf.mxu1 }
  0xd1   : > { %v325_v8 = vmul.f32 %v505_v6, %v484_v5  ;;  %v329_v10 = vmul.f32 %v509_v9, %v484_v5 }
  0xd2   : > { %v285_v11 = vpop.f32.mrf.mxu0  ;;  %v301_v14 = vpop.f32.mrf.mxu1 }
  0xd3   : > { %v614_v12 = vadd.f32 %v485_v7, %v325_v8  ;;  %v323_v13 = vmul.f32 %v484_v5, %v285_v11  ;;  %v344_v15 = vadd.f32 %v485_v7, %v329_v10  ;;  %v327_v16 = vmul.f32 %v484_v5, %v301_v14 }
  0xd4   : > { %v506_v17 = vpop.f32.mrf.mxu0  ;;  %v510_v21 = vpop.f32.mrf.mxu1 }
  0xd5   : > { %v488_v18 = vmul.f32 -1.442695, %v614_v12  ;;  %v338_v19 = vadd.f32 %v485_v7, %v323_v13  ;;  %v326_v20 = vmul.f32 %v506_v17, %v484_v5  ;;  %v492_v22 = vmul.f32 -1.442695, %v344_v15 }
  0xd6   : > { %v342_v23 = vadd.f32 %v485_v7, %v327_v16  ;;  %v330_v24 = vmul.f32 %v510_v21, %v484_v5  ;;  %v288_v25 = vpop.f32.mrf.mxu0  ;;  %v304_v29 = vpop.f32.mrf.mxu1 }
  0xd7   : > { %526 = vpow2.f32 %v488_v18  ;;  %v486_v26 = vmul.f32 -1.442695, %v338_v19  ;;  %v341_v27 = vadd.f32 %v485_v7, %v326_v20  ;;  %v324_v28 = vmul.f32 %v484_v5, %v288_v25 }
  0xd8   : > { %528 = vpow2.f32 %v492_v22  ;;  %v490_v30 = vmul.f32 -1.442695, %v342_v23  ;;  %v345_v31 = vadd.f32 %v485_v7, %v330_v24  ;;  %v328_v32 = vmul.f32 %v484_v5, %v304_v29 }
  0xd9   : > { %530 = vpow2.f32 %v486_v26  ;;  %v489_v33 = vmul.f32 -1.442695, %v341_v27  ;;  %v339_v34 = vadd.f32 %v485_v7, %v324_v28 }
  0xda   : > { %532 = vpow2.f32 %v490_v30  ;;  %v493_v35 = vmul.f32 -1.442695, %v345_v31  ;;  %v343_v36 = vadd.f32 %v485_v7, %v328_v32 }
  0xdb   : > { %534 = vpow2.f32 %v489_v33  ;;  %v487_v37 = vmul.f32 -1.442695, %v339_v34 }
  0xdc   : > { %536 = vpow2.f32 %v493_v35  ;;  %v491_v38 = vmul.f32 -1.442695, %v343_v36 }
  0xdd   : > { %538 = vpow2.f32 %v487_v37 }
  0xde   : > { %540 = vpow2.f32 %v491_v38 }
  0xe4   : > { %v527_v39 = vpop.eup %526 }
  0xe5   : > { %v529_v40 = vpop.eup %528  ;;  %v372_v41 = vadd.f32 1.0, %v527_v39 }
  0xe6   : > { %v531_v42 = vpop.eup %530  ;;  %v376_v43 = vadd.f32 1.0, %v529_v40 }
  0xe7   : > { %v533_v44 = vpop.eup %532  ;;  %542 = vrcp.f32 %v372_v41  ;;  %v370_v45 = vadd.f32 1.0, %v531_v42 }
  0xe8   : > { %v535_v46 = vpop.eup %534  ;;  %544 = vrcp.f32 %v376_v43  ;;  %v374_v47 = vadd.f32 1.0, %v533_v44 }
  0xe9   : > { %v537_v48 = vpop.eup %536  ;;  %546 = vrcp.f32 %v370_v45  ;;  %v373_v49 = vadd.f32 1.0, %v535_v46 }
  0xea   : > { %v539_v50 = vpop.eup %538  ;;  %548 = vrcp.f32 %v374_v47  ;;  %v377_v51 = vadd.f32 1.0, %v537_v48 }
  0xeb   : > { %v541_v52 = vpop.eup %540  ;;  %550 = vrcp.f32 %v373_v49  ;;  %v371_v53 = vadd.f32 1.0, %v539_v50 }
  0xec   : > { %552 = vrcp.f32 %v377_v51  ;;  %v375_v54 = vadd.f32 1.0, %v541_v52 }
  0xed   : > { %554 = vrcp.f32 %v371_v53 }
  0xee   : > { %556 = vrcp.f32 %v375_v54 }
  0xf4   : > { %v543_v55 = vpop.eup %542 }
  0xf5   : > { %v545_v56 = vpop.eup %544  ;;  %v396_v57 = vmul.f32 %v543_v55, %v614_v12 }
  0xf6   : > { %v547_v58 = vpop.eup %546  ;;  %v400_v59 = vmul.f32 %v545_v56, %v344_v15 }
  0xf7   : > { %v549_v60 = vpop.eup %548  ;;  %404 = vst [vmem:[%s199_s5 + $0x10] sm:$0xff] %v396_v57  ;;  %v394_v61 = vmul.f32 %v547_v58, %v338_v19 }
  0xf8   : > { %v551_v62 = vpop.eup %550  ;;  %408 = vst [vmem:[%s199_s5 + $0x30] sm:$0xff] %v400_v59  ;;  %v398_v63 = vmul.f32 %v549_v60, %v342_v23 }
  0xf9   : > { %v553_v0 = vpop.eup %552  ;;  %402 = vst [vmem:[%s199_s5] sm:$0xff] %v394_v61  ;;  %v397_v1 = vmul.f32 %v551_v62, %v341_v27 }
  0xfa   : > { %v555_v2 = vpop.eup %554  ;;  %406 = vst [vmem:[%s199_s5 + $0x20] sm:$0xff] %v398_v63  ;;  %v401_v3 = vmul.f32 %v553_v0, %v345_v31 }
  0xfb   : > { %v557_v4 = vpop.eup %556  ;;  %405 = vst [vmem:[%s199_s5 + $0x18] sm:$0xff] %v397_v1  ;;  %v395_v5 = vmul.f32 %v555_v2, %v339_v34 }
  0xfc   : > { %409 = vst [vmem:[%s199_s5 + $0x38] sm:$0xff] %v401_v3  ;;  %v399_v6 = vmul.f32 %v557_v4, %v343_v36 }
  0xfd   : > { %403 = vst [vmem:[%s199_s5 + $0x8] sm:$0xff] %v395_v5 }
  0xfe   : > { %407 = vst [vmem:[%s199_s5 + $0x28] sm:$0xff] %v399_v6 }
  0xff PF: > { %s14_s15 = sadd.s32 1, %s564_s15  }
 0x100   : > { %p11_p4 = scmp.ge.s32.totalorder %s14_s15, 4  }
 0x102   :  { %13 = sbr.rel (!%p11_p4) target bundleno = 1 (0x1), region = 66 }

</bundles_post_ra>
